<compile_context>
chip_gen: v7x
topology: tpu7x:2x2x1
jax: 0.10.0
libtpu: 0.0.40
codegen_flags: <defaults>
</compile_context>

<pallas_src>
import functools

import jax
import jax.numpy as jnp
from jax import lax
from jax.experimental import pallas as pl
from jax.experimental.pallas import tpu as pltpu


def _attn_agg_kernel(x_ref, qpad_ref, wkvT_ref, bkv_ref, woT_ref, bo_ref,
                     hmask_ref, kbias_ref, out_ref, kv_ref, *,
                     num_heads, mask_keys):
    """One grid step = `bt` batch elements, fully batched (no per-batch loop)."""
    bt, N, E = x_ref.shape
    HM = qpad_ref.shape[0]
    H = num_heads
    M = HM // H
    cdt = x_ref.dtype                       # MXU compute dtype (bf16 or f32)

    # ---- Fused K/V projection: one (bt*N, E) x (E, 2E) matmul, staged in VMEM scratch.
    xf = x_ref[...].reshape(bt * N, E)
    kv_ref[...] = (jnp.dot(xf, wkvT_ref[...], preferred_element_type=jnp.float32)
                   + bkv_ref[...])
    k = kv_ref[:, :E].astype(cdt)                        # (bt*N, E)
    v = kv_ref[:, E:].astype(cdt).reshape(bt, N, E)      # (bt, N, E)

    # ---- Scores for ALL batches & heads in ONE matmul (E-E contraction) -> (bt*N, H*M).
    s = lax.dot_general(k, qpad_ref[...], (((1,), (1,)), ((), ())),
                        preferred_element_type=jnp.float32)
    s = s.reshape(bt, N, HM)                 # leading-dim split only (layout preserving)
    s = pltpu.einshape("bnm->bmn", s)        # (bt, H*M, N): softmax along the lane axis
    if mask_keys:
        s = s + kbias_ref[...]               # -1e30 on zero-padded key rows

    # ---- Softmax over keys, in f32.
    m = jnp.max(s, axis=-1, keepdims=True)
    p = jnp.exp(s - m)
    l = jnp.sum(p, axis=-1, keepdims=True)
    p = p * (1.0 / l)                        # only bt*H*M exact divides, then a VPU mul

    # ---- PV for the whole tile: one bt-batched dot_general (canonical orientation).
    pv = lax.dot_general(p.astype(cdt), v, (((2,), (1,)), ((0,), (0,))),
                         preferred_element_type=jnp.float32)       # (bt, H*M, E)

    # ---- Recombine heads: select each head's columns and sum (pure VPU, no lane slicing).
    o = jnp.sum(pv.reshape(bt, H, M, E) * hmask_ref[...], axis=1)   # (bt, M, E)

    # ---- Output projection for the whole tile + single lane-dense full-block store.
    out = (jnp.dot(o.reshape(bt * M, E).astype(cdt), woT_ref[...],
                   preferred_element_type=jnp.float32) + bo_ref[...])
    out_ref[...] = out.reshape(bt, M, E).astype(out_ref.dtype)


def _vmem_limit_bytes():
    """~48 MiB on v7x (64 MiB/TC), ~96 MiB on v5e/v6e (128 MiB); conservative fallback."""
    try:
        cap = int(pltpu.get_tpu_info().vmem_capacity_bytes)
    except Exception:
        cap = 64 * 1024 * 1024
    return int(min(cap * 3 // 4, 100 * 1024 * 1024))


def _pick_block_batch(B, N, E, M, H, compute_itemsize, out_itemsize, vmem_limit,
                      target_rows=2048):
    """Size the batch tile from the VMEM budget (~2K projection rows per step) and
    prefer a tile size that yields an even grid length (v7x megacore)."""
    HM = H * M
    weight_bytes = (HM * E + 3 * E * E) * compute_itemsize + (3 * E + H * E + N) * 4
    per_b = (2 * N * E * compute_itemsize      # x tile, double buffered
             + 2 * M * E * out_itemsize        # out tile, double buffered
             + N * 2 * E * 4                   # k/v scratch (f32)
             + 2 * N * HM * 4                  # scores + softmax temporaries (f32)
             + HM * E * 4                      # PV accumulator (f32)
             + M * E * 4)                      # recombined heads (f32)
    budget = max(vmem_limit - weight_bytes - (4 << 20), per_b)
    bt_cap = max(1, budget // (2 * per_b))     # 2x headroom for compiler temporaries
    bt = int(max(1, min(B, bt_cap, pl.cdiv(target_rows, N))))
    if pl.cdiv(B, bt) > 1:
        lo = max(1, (3 * bt) // 4)
        for cand in range(bt, lo - 1, -1):     # even grid keeps both v7x cores busy
            if pl.cdiv(B, cand) % 2 == 0:
                return cand
    return bt


def attention_aggregator(x, params, num_heads, *, bt=None, compute_dtype=jnp.bfloat16):
    B, N, E = x.shape
    M = params["query"].shape[0]
    H = num_heads
    hd = E // H
    scale = 1.0 / float(hd) ** 0.5
    cdt = jnp.dtype(compute_dtype)

    # ---- Hoisted, batch-independent preprocessing (plain XLA, runs once) ----
    qp = (params["query"] @ params["wq"].T + params["bq"]) * scale        # (M, E)
    head_mask = (jnp.arange(E)[None, :] // hd
                 == jnp.arange(H)[:, None]).astype(jnp.float32)           # (H, E)
    qpad = (qp[None, :, :] * head_mask[:, None, :]).reshape(H * M, E)     # (H*M, E)
    hmask = head_mask[:, None, :]                                         # (H, 1, E)
    wkvT = jnp.concatenate([params["wk"].T, params["wv"].T], axis=1)      # fused (E, 2E)
    bkv = jnp.concatenate([params["bk"], params["bv"]], axis=1)           # (1, 2E)
    woT = params["wo"].T
    bo = params["bo"]

    x_c = x.astype(cdt)
    qpad_c, wkvT_c, woT_c = qpad.astype(cdt), wkvT.astype(cdt), woT.astype(cdt)

    # ---- Pad N to a sublane multiple; mask padded keys out of the softmax ----
    N_pad = -(-N // 8) * 8
    kbias = jnp.zeros((1, N_pad), jnp.float32)
    if N_pad != N:
        x_c = jnp.pad(x_c, ((0, 0), (0, N_pad - N), (0, 0)))
        kbias = kbias.at[:, N:].set(-1e30)

    # ---- Tile the batch axis; pad B so the tile size never degenerates ----
    vmem_limit = _vmem_limit_bytes()
    if bt is None:
        bt = _pick_block_batch(B, N_pad, E, M, H, cdt.itemsize, x.dtype.itemsize,
                               vmem_limit)
    bt = int(min(bt, B))
    grid_len = int(pl.cdiv(B, bt))
    B_pad = grid_len * bt
    if B_pad != B:
        x_c = jnp.pad(x_c, ((0, B_pad - B), (0, 0), (0, 0)))

    kernel = functools.partial(_attn_agg_kernel, num_heads=H, mask_keys=(N_pad != N))

    cost = pl.CostEstimate(
        flops=int(2 * B * N * E * 2 * E            # fused K/V projection
                  + 4 * B * H * M * N * E          # scores + PV (head-padded)
                  + 2 * B * M * E * E),            # output projection
        transcendentals=int(B * H * M * N),
        bytes_accessed=int(x_c.size * cdt.itemsize + B_pad * M * E * x.dtype.itemsize
                           + (qpad_c.size + wkvT_c.size + woT_c.size) * cdt.itemsize
                           + 4 * (bkv.size + bo.size + hmask.size + kbias.size)))

    def build(single_buffer_weights):
        def inv(shape):
            idx = lambda i: (0,) * len(shape)
            if single_buffer_weights:
                # Grid-invariant operands: keep ONE copy in VMEM (no double buffering).
                return pl.BlockSpec(shape, idx, pipeline_mode=pl.Buffered(buffer_count=1))
            return pl.BlockSpec(shape, idx)

        in_specs = [
            pl.BlockSpec((bt, N_pad, E), lambda i: (i, 0, 0)),   # x batch tile
            inv((H * M, E)),        # scaled, head-padded queries
            inv((E, 2 * E)),        # fused [Wk^T | Wv^T]
            inv((1, 2 * E)),        # fused [bk | bv]
            inv((E, E)),            # Wo^T
            inv((1, E)),            # bo
            inv((H, 1, E)),         # head column mask
            inv((1, N_pad)),        # additive key-padding mask
        ]
        out_specs = pl.BlockSpec((bt, M, E), lambda i: (i, 0, 0))
        return pl.pallas_call(
            kernel,
            out_shape=jax.ShapeDtypeStruct((B_pad, M, E), x.dtype),
            grid=(grid_len,),
            in_specs=in_specs,
            out_specs=out_specs,
            scratch_shapes=[pltpu.VMEM((bt * N_pad, 2 * E), jnp.float32)],
            compiler_params=pltpu.CompilerParams(
                dimension_semantics=("parallel",),
                vmem_limit_bytes=vmem_limit),
            cost_estimate=cost,
        )

    args = (x_c, qpad_c, wkvT_c, bkv, woT_c, bo, hmask, kbias)
    try:
        out = build(True)(*args)
    except Exception:
        # Fallback if single-buffering via pipeline_mode is unavailable in this jax build.
        out = build(False)(*args)
    return out[:B]


def reference(x, p, num_heads):
    """Pure-JAX mirror of torch.nn.MultiheadAttention(batch_first=True) forward."""
    B, N, E = x.shape
    M = p["query"].shape[0]
    hd = E // num_heads
    q = jnp.broadcast_to(p["query"][None], (B, M, E))
    Q = q @ p["wq"].T + p["bq"]
    K = x @ p["wk"].T + p["bk"]
    V = x @ p["wv"].T + p["bv"]
    Qh = Q.reshape(B, M, num_heads, hd).transpose(0, 2, 1, 3)
    Kh = K.reshape(B, N, num_heads, hd).transpose(0, 2, 1, 3)
    Vh = V.reshape(B, N, num_heads, hd).transpose(0, 2, 1, 3)
    scores = jnp.einsum("bhmd,bhnd->bhmn", Qh, Kh) / jnp.sqrt(float(hd))
    attn = jax.nn.softmax(scores, axis=-1)
    O = jnp.einsum("bhmn,bhnd->bhmd", attn, Vh).transpose(0, 2, 1, 3).reshape(B, M, E)
    return O @ p["wo"].T + p["bo"]


def init_params(key, input_dim, output_dim):
    """Deterministic synthetic parameters (shapes match nn.MultiheadAttention)."""
    ks = jax.random.split(key, 6)
    E, M = input_dim, output_dim
    query = jax.random.normal(ks[0], (M, E), jnp.float32)
    in_proj_w = 0.1 * jax.random.normal(ks[1], (3 * E, E), jnp.float32)
    in_proj_b = 0.1 * jax.random.normal(ks[2], (3 * E,), jnp.float32)
    out_proj_w = 0.1 * jax.random.normal(ks[3], (E, E), jnp.float32)
    out_proj_b = 0.1 * jax.random.normal(ks[4], (E,), jnp.float32)
    return {
        "query": query,
        "wq": in_proj_w[:E], "wk": in_proj_w[E:2 * E], "wv": in_proj_w[2 * E:],
        "bq": in_proj_b[:E].reshape(1, E),
        "bk": in_proj_b[E:2 * E].reshape(1, E),
        "bv": in_proj_b[2 * E:].reshape(1, E),
        "wo": out_proj_w, "bo": out_proj_b.reshape(1, E),
    }


if __name__ == "__main__":
    B, N = 2, 16          # batch, number of input points
    input_dim = 32        # E (embed dim)
    output_dim = 8        # M (number of learned output queries)
    num_heads = 2         # E must be divisible by num_heads

    key = jax.random.PRNGKey(0)
    kx, kp = jax.random.split(key)
    x = jax.random.normal(kx, (B, N, input_dim), jnp.float32)
    params = init_params(kp, input_dim, output_dim)
    ref = reference(x, params, num_heads)

    # f32 MXU path: strict check against the pure-JAX reference.
    out_f32 = jax.block_until_ready(
        attention_aggregator(x, params, num_heads, compute_dtype=jnp.float32))
    assert out_f32.shape == (B, output_dim, input_dim), out_f32.shape
    if not jnp.allclose(out_f32, ref, atol=2e-4, rtol=2e-4):
        raise AssertionError("Pallas kernel (f32) output mismatch vs JAX reference")

    # bf16 MXU-operand path (default; ~2x MXU throughput, half the x/weight bytes).
    out_bf16 = jax.block_until_ready(attention_aggregator(x, params, num_heads))
    assert out_bf16.shape == (B, output_dim, input_dim), out_bf16.shape
    if not jnp.allclose(out_bf16, ref, atol=3e-2, rtol=3e-2):
        raise AssertionError("Pallas kernel (bf16) output mismatch vs JAX reference")

    print("KERNEL_OK")
</pallas_src>

<mosaic_0001>
module attributes {stable_mosaic.version = 11 : i64} {
  func.func @_attn_agg_kernel(%arg0: i32, %arg1: memref<2x16x32xf32, #tpu.memory_space<vmem>>, %arg2: memref<16x32xf32, #tpu.memory_space<vmem>>, %arg3: memref<32x64xf32, #tpu.memory_space<vmem>>, %arg4: memref<1x64xf32, #tpu.memory_space<vmem>>, %arg5: memref<32x32xf32, #tpu.memory_space<vmem>>, %arg6: memref<1x32xf32, #tpu.memory_space<vmem>>, %arg7: memref<2x1x32xf32, #tpu.memory_space<vmem>>, %arg8: memref<1x16xf32, #tpu.memory_space<vmem>>, %arg9: memref<2x8x32xf32, #tpu.memory_space<vmem>>, %arg10: memref<32x64xf32, #tpu.memory_space<vmem>>) attributes {dimension_semantics = [#tpu.dimension_semantics<parallel>], iteration_bounds = array<i64: 1>, scalar_prefetch = 0 : i64, scratch_operands = 1 : i64, tpu.core_type = #tpu.core_type<tc>, window_params = [{transform_indices = @transform_0, window_bounds = array<i64: 2, 16, 32>}, {pipeline_mode = #tpu.pipeline_mode<synchronous>, transform_indices = @transform_1, window_bounds = array<i64: 16, 32>}, {pipeline_mode = #tpu.pipeline_mode<synchronous>, transform_indices = @transform_2, window_bounds = array<i64: 32, 64>}, {pipeline_mode = #tpu.pipeline_mode<synchronous>, transform_indices = @transform_3, window_bounds = array<i64: 1, 64>}, {pipeline_mode = #tpu.pipeline_mode<synchronous>, transform_indices = @transform_4, window_bounds = array<i64: 32, 32>}, {pipeline_mode = #tpu.pipeline_mode<synchronous>, transform_indices = @transform_5, window_bounds = array<i64: 1, 32>}, {pipeline_mode = #tpu.pipeline_mode<synchronous>, transform_indices = @transform_6, window_bounds = array<i64: 2, 1, 32>}, {pipeline_mode = #tpu.pipeline_mode<synchronous>, transform_indices = @transform_7, window_bounds = array<i64: 1, 16>}, {transform_indices = @transform_8, window_bounds = array<i64: 2, 8, 32>}]} {
    %c0 = arith.constant 0 : index
    %c0_0 = arith.constant 0 : index
    %c0_1 = arith.constant 0 : index
    %0 = vector.load %arg1[%c0, %c0_0, %c0_1] : memref<2x16x32xf32, #tpu.memory_space<vmem>>, vector<2x16x32xf32>
    %1 = vector.shape_cast %0 : vector<2x16x32xf32> to vector<32x32xf32>
    %c0_2 = arith.constant 0 : index
    %c0_3 = arith.constant 0 : index
    %2 = vector.load %arg3[%c0_2, %c0_3] : memref<32x64xf32, #tpu.memory_space<vmem>>, vector<32x64xf32>
    %cst = arith.constant dense<0.000000e+00> : vector<32x64xf32>
    %3 = tpu.matmul %1, %2, %cst {dimension_numbers = #tpu.dot_dimension_numbers<[1], [0], [0], [1], [0, 0, 1, 1], [], []>} : vector<32x32xf32>, vector<32x64xf32>, vector<32x64xf32> -> vector<32x64xf32>
    %c0_4 = arith.constant 0 : index
    %c0_5 = arith.constant 0 : index
    %4 = vector.load %arg4[%c0_4, %c0_5] : memref<1x64xf32, #tpu.memory_space<vmem>>, vector<1x64xf32>
    %5 = vector.broadcast %4 : vector<1x64xf32> to vector<32x64xf32>
    %6 = arith.addf %3, %5 : vector<32x64xf32>
    %c0_6 = arith.constant 0 : index
    %c0_7 = arith.constant 0 : index
    %7 = vector.load %arg10[%c0_6, %c0_7] : memref<32x64xf32, #tpu.memory_space<vmem>>, vector<32x64xf32>
    tpu.vector_store %arg10[%c0_6, %c0_7], %6 {strides = array<i32>} : memref<32x64xf32, #tpu.memory_space<vmem>>, vector<32x64xf32>,
    %c0_8 = arith.constant 0 : index
    %c0_9 = arith.constant 0 : index
    %8 = vector.load %arg10[%c0_8, %c0_9] : memref<32x64xf32, #tpu.memory_space<vmem>>, vector<32x32xf32>
    %c0_10 = arith.constant 0 : index
    %c32 = arith.constant 32 : index
    %9 = vector.load %arg10[%c0_10, %c32] : memref<32x64xf32, #tpu.memory_space<vmem>>, vector<32x32xf32>
    %10 = vector.shape_cast %9 : vector<32x32xf32> to vector<2x16x32xf32>
    %c0_11 = arith.constant 0 : index
    %c0_12 = arith.constant 0 : index
    %11 = vector.load %arg2[%c0_11, %c0_12] : memref<16x32xf32, #tpu.memory_space<vmem>>, vector<16x32xf32>
    %cst_13 = arith.constant dense<0.000000e+00> : vector<32x16xf32>
    %12 = tpu.matmul %8, %11, %cst_13 {dimension_numbers = #tpu.dot_dimension_numbers<[1], [1], [0], [0], [0, 0, 1, 0], [], []>} : vector<32x32xf32>, vector<16x32xf32>, vector<32x16xf32> -> vector<32x16xf32>
    %13 = vector.shape_cast %12 : vector<32x16xf32> to vector<2x16x16xf32>
    %14 = tpu.transpose %13, [0, 2, 1] : vector<2x16x16xf32> -> vector<2x16x16xf32>
    %cst_14 = arith.constant dense<0xFF800000> : vector<2x16xf32>
    %15 = vector.multi_reduction <maximumf>, %14, %cst_14 [2] : vector<2x16x16xf32> to vector<2x16xf32>
    %16 = vector.shape_cast %15 : vector<2x16xf32> to vector<2x16x1xf32>
    %17 = vector.broadcast %16 : vector<2x16x1xf32> to vector<2x16x16xf32>
    %18 = arith.subf %14, %17 : vector<2x16x16xf32>
    %19 = math.exp %18 : vector<2x16x16xf32>
    %cst_15 = arith.constant dense<0.000000e+00> : vector<2x16xf32>
    %20 = vector.multi_reduction <add>, %19, %cst_15 [2] : vector<2x16x16xf32> to vector<2x16xf32>
    %21 = vector.shape_cast %20 : vector<2x16xf32> to vector<2x16x1xf32>
    %cst_16 = arith.constant 1.000000e+00 : f32
    %22 = vector.broadcast %cst_16 : f32 to vector<2x16x1xf32>
    %23 = arith.divf %22, %21 : vector<2x16x1xf32>
    %24 = vector.broadcast %23 : vector<2x16x1xf32> to vector<2x16x16xf32>
    %25 = arith.mulf %19, %24 : vector<2x16x16xf32>
    %cst_17 = arith.constant dense<0.000000e+00> : vector<2x16x32xf32>
    %26 = tpu.matmul %25, %10, %cst_17 {dimension_numbers = #tpu.dot_dimension_numbers<[2], [1], [1], [2], [0, 0, 0, 1, 1, 2], [0], [0]>} : vector<2x16x16xf32>, vector<2x16x32xf32>, vector<2x16x32xf32> -> vector<2x16x32xf32>
    %27 = vector.shape_cast %26 : vector<2x16x32xf32> to vector<2x2x8x32xf32>
    %c0_18 = arith.constant 0 : index
    %c0_19 = arith.constant 0 : index
    %c0_20 = arith.constant 0 : index
    %28 = vector.load %arg7[%c0_18, %c0_19, %c0_20] : memref<2x1x32xf32, #tpu.memory_space<vmem>>, vector<2x1x32xf32>
    %29 = vector.shape_cast %28 : vector<2x1x32xf32> to vector<1x2x1x32xf32>
    %30 = vector.broadcast %29 : vector<1x2x1x32xf32> to vector<2x2x8x32xf32>
    %31 = arith.mulf %27, %30 : vector<2x2x8x32xf32>
    %cst_21 = arith.constant dense<0.000000e+00> : vector<2x8x32xf32>
    %32 = vector.multi_reduction <add>, %31, %cst_21 [1] : vector<2x2x8x32xf32> to vector<2x8x32xf32>
    %33 = vector.shape_cast %32 : vector<2x8x32xf32> to vector<16x32xf32>
    %c0_22 = arith.constant 0 : index
    %c0_23 = arith.constant 0 : index
    %34 = vector.load %arg5[%c0_22, %c0_23] : memref<32x32xf32, #tpu.memory_space<vmem>>, vector<32x32xf32>
    %cst_24 = arith.constant dense<0.000000e+00> : vector<16x32xf32>
    %35 = tpu.matmul %33, %34, %cst_24 {dimension_numbers = #tpu.dot_dimension_numbers<[1], [0], [0], [1], [0, 0, 1, 1], [], []>} : vector<16x32xf32>, vector<32x32xf32>, vector<16x32xf32> -> vector<16x32xf32>
    %c0_25 = arith.constant 0 : index
    %c0_26 = arith.constant 0 : index
    %36 = vector.load %arg6[%c0_25, %c0_26] : memref<1x32xf32, #tpu.memory_space<vmem>>, vector<1x32xf32>
    %37 = vector.broadcast %36 : vector<1x32xf32> to vector<16x32xf32>
    %38 = arith.addf %35, %37 : vector<16x32xf32>
    %39 = vector.shape_cast %38 : vector<16x32xf32> to vector<2x8x32xf32>
    %c0_27 = arith.constant 0 : index
    %c0_28 = arith.constant 0 : index
    %c0_29 = arith.constant 0 : index
    %40 = vector.load %arg9[%c0_27, %c0_28, %c0_29] : memref<2x8x32xf32, #tpu.memory_space<vmem>>, vector<2x8x32xf32>
    tpu.vector_store %arg9[%c0_27, %c0_28, %c0_29], %39 {strides = array<i32>} : memref<2x8x32xf32, #tpu.memory_space<vmem>>, vector<2x8x32xf32>,
    return
  }
  func.func @transform_0(%arg0: i32) -> (i32, i32, i32) {
    %c0_i32 = arith.constant 0 : i32
    %c0_i32_0 = arith.constant 0 : i32
    %c0_i32_1 = arith.constant 0 : i32
    return %arg0, %c0_i32, %c0_i32_0 : i32, i32, i32
  }
  func.func @transform_1(%arg0: i32) -> (i32, i32) {
    %c0_i32 = arith.constant 0 : i32
    %c0_i32_0 = arith.constant 0 : i32
    %c0_i32_1 = arith.constant 0 : i32
    return %c0_i32, %c0_i32_0 : i32, i32
  }
  func.func @transform_2(%arg0: i32) -> (i32, i32) {
    %c0_i32 = arith.constant 0 : i32
    %c0_i32_0 = arith.constant 0 : i32
    %c0_i32_1 = arith.constant 0 : i32
    return %c0_i32, %c0_i32_0 : i32, i32
  }
  func.func @transform_3(%arg0: i32) -> (i32, i32) {
    %c0_i32 = arith.constant 0 : i32
    %c0_i32_0 = arith.constant 0 : i32
    %c0_i32_1 = arith.constant 0 : i32
    return %c0_i32, %c0_i32_0 : i32, i32
  }
  func.func @transform_4(%arg0: i32) -> (i32, i32) {
    %c0_i32 = arith.constant 0 : i32
    %c0_i32_0 = arith.constant 0 : i32
    %c0_i32_1 = arith.constant 0 : i32
    return %c0_i32, %c0_i32_0 : i32, i32
  }
  func.func @transform_5(%arg0: i32) -> (i32, i32) {
    %c0_i32 = arith.constant 0 : i32
    %c0_i32_0 = arith.constant 0 : i32
    %c0_i32_1 = arith.constant 0 : i32
    return %c0_i32, %c0_i32_0 : i32, i32
  }
  func.func @transform_6(%arg0: i32) -> (i32, i32, i32) {
    %c0_i32 = arith.constant 0 : i32
    %c0_i32_0 = arith.constant 0 : i32
    %c0_i32_1 = arith.constant 0 : i32
    %c0_i32_2 = arith.constant 0 : i32
    return %c0_i32, %c0_i32_0, %c0_i32_1 : i32, i32, i32
  }
  func.func @transform_7(%arg0: i32) -> (i32, i32) {
    %c0_i32 = arith.constant 0 : i32
    %c0_i32_0 = arith.constant 0 : i32
    %c0_i32_1 = arith.constant 0 : i32
    return %c0_i32, %c0_i32_0 : i32, i32
  }
  func.func @transform_8(%arg0: i32) -> (i32, i32, i32) {
    %c0_i32 = arith.constant 0 : i32
    %c0_i32_0 = arith.constant 0 : i32
    %c0_i32_1 = arith.constant 0 : i32
    return %arg0, %c0_i32, %c0_i32_0 : i32, i32, i32
  }
}

module attributes {stable_mosaic.version = 11 : i64} {
  func.func @_attn_agg_kernel(%arg0: i32, %arg1: memref<2x16x32xf32, #tpu.memory_space<vmem>>, %arg2: memref<16x32xf32, #tpu.memory_space<vmem>>, %arg3: memref<32x64xf32, #tpu.memory_space<vmem>>, %arg4: memref<1x64xf32, #tpu.memory_space<vmem>>, %arg5: memref<32x32xf32, #tpu.memory_space<vmem>>, %arg6: memref<1x32xf32, #tpu.memory_space<vmem>>, %arg7: memref<2x1x32xf32, #tpu.memory_space<vmem>>, %arg8: memref<1x16xf32, #tpu.memory_space<vmem>>, %arg9: memref<2x8x32xf32, #tpu.memory_space<vmem>>, %arg10: memref<32x64xf32, #tpu.memory_space<vmem>>) attributes {dimension_semantics = [#tpu.dimension_semantics<parallel>], iteration_bounds = array<i64: 1>, scalar_prefetch = 0 : i64, scratch_operands = 1 : i64, tpu.core_type = #tpu.core_type<tc>, window_params = [{transform_indices = @transform_0, window_bounds = array<i64: 2, 16, 32>}, {pipeline_mode = #tpu.pipeline_mode<synchronous>, transform_indices = @transform_1, window_bounds = array<i64: 16, 32>}, {pipeline_mode = #tpu.pipeline_mode<synchronous>, transform_indices = @transform_2, window_bounds = array<i64: 32, 64>}, {pipeline_mode = #tpu.pipeline_mode<synchronous>, transform_indices = @transform_3, window_bounds = array<i64: 1, 64>}, {pipeline_mode = #tpu.pipeline_mode<synchronous>, transform_indices = @transform_4, window_bounds = array<i64: 32, 32>}, {pipeline_mode = #tpu.pipeline_mode<synchronous>, transform_indices = @transform_5, window_bounds = array<i64: 1, 32>}, {pipeline_mode = #tpu.pipeline_mode<synchronous>, transform_indices = @transform_6, window_bounds = array<i64: 2, 1, 32>}, {pipeline_mode = #tpu.pipeline_mode<synchronous>, transform_indices = @transform_7, window_bounds = array<i64: 1, 16>}, {transform_indices = @transform_8, window_bounds = array<i64: 2, 8, 32>}]} {
    %c0 = arith.constant 0 : index
    %c0_0 = arith.constant 0 : index
    %c0_1 = arith.constant 0 : index
    %0 = vector.load %arg1[%c0, %c0_0, %c0_1] : memref<2x16x32xf32, #tpu.memory_space<vmem>>, vector<2x16x32xf32>
    %1 = vector.shape_cast %0 : vector<2x16x32xf32> to vector<32x32xf32>
    %c0_2 = arith.constant 0 : index
    %c0_3 = arith.constant 0 : index
    %2 = vector.load %arg3[%c0_2, %c0_3] : memref<32x64xf32, #tpu.memory_space<vmem>>, vector<32x64xf32>
    %cst = arith.constant dense<0.000000e+00> : vector<32x64xf32>
    %3 = tpu.matmul %1, %2, %cst {dimension_numbers = #tpu.dot_dimension_numbers<[1], [0], [0], [1], [0, 0, 1, 1], [], []>} : vector<32x32xf32>, vector<32x64xf32>, vector<32x64xf32> -> vector<32x64xf32>
    %c0_4 = arith.constant 0 : index
    %c0_5 = arith.constant 0 : index
    %4 = vector.load %arg4[%c0_4, %c0_5] : memref<1x64xf32, #tpu.memory_space<vmem>>, vector<1x64xf32>
    %5 = vector.broadcast %4 : vector<1x64xf32> to vector<32x64xf32>
    %6 = arith.addf %3, %5 : vector<32x64xf32>
    %c0_6 = arith.constant 0 : index
    %c0_7 = arith.constant 0 : index
    %7 = vector.load %arg10[%c0_6, %c0_7] : memref<32x64xf32, #tpu.memory_space<vmem>>, vector<32x64xf32>
    tpu.vector_store %arg10[%c0_6, %c0_7], %6 {strides = array<i32>} : memref<32x64xf32, #tpu.memory_space<vmem>>, vector<32x64xf32>,
    %c0_8 = arith.constant 0 : index
    %c0_9 = arith.constant 0 : index
    %8 = vector.load %arg10[%c0_8, %c0_9] : memref<32x64xf32, #tpu.memory_space<vmem>>, vector<32x32xf32>
    %c0_10 = arith.constant 0 : index
    %c32 = arith.constant 32 : index
    %9 = vector.load %arg10[%c0_10, %c32] : memref<32x64xf32, #tpu.memory_space<vmem>>, vector<32x32xf32>
    %10 = vector.shape_cast %9 : vector<32x32xf32> to vector<2x16x32xf32>
    %c0_11 = arith.constant 0 : index
    %c0_12 = arith.constant 0 : index
    %11 = vector.load %arg2[%c0_11, %c0_12] : memref<16x32xf32, #tpu.memory_space<vmem>>, vector<16x32xf32>
    %cst_13 = arith.constant dense<0.000000e+00> : vector<32x16xf32>
    %12 = tpu.matmul %8, %11, %cst_13 {dimension_numbers = #tpu.dot_dimension_numbers<[1], [1], [0], [0], [0, 0, 1, 0], [], []>} : vector<32x32xf32>, vector<16x32xf32>, vector<32x16xf32> -> vector<32x16xf32>
    %13 = vector.shape_cast %12 : vector<32x16xf32> to vector<2x16x16xf32>
    %14 = tpu.transpose %13, [0, 2, 1] : vector<2x16x16xf32> -> vector<2x16x16xf32>
    %cst_14 = arith.constant dense<0xFF800000> : vector<2x16xf32>
    %15 = vector.multi_reduction <maximumf>, %14, %cst_14 [2] : vector<2x16x16xf32> to vector<2x16xf32>
    %16 = vector.shape_cast %15 : vector<2x16xf32> to vector<2x16x1xf32>
    %17 = vector.broadcast %16 : vector<2x16x1xf32> to vector<2x16x16xf32>
    %18 = arith.subf %14, %17 : vector<2x16x16xf32>
    %19 = math.exp %18 : vector<2x16x16xf32>
    %cst_15 = arith.constant dense<0.000000e+00> : vector<2x16xf32>
    %20 = vector.multi_reduction <add>, %19, %cst_15 [2] : vector<2x16x16xf32> to vector<2x16xf32>
    %21 = vector.shape_cast %20 : vector<2x16xf32> to vector<2x16x1xf32>
    %cst_16 = arith.constant 1.000000e+00 : f32
    %22 = vector.broadcast %cst_16 : f32 to vector<2x16x1xf32>
    %23 = arith.divf %22, %21 : vector<2x16x1xf32>
    %24 = vector.broadcast %23 : vector<2x16x1xf32> to vector<2x16x16xf32>
    %25 = arith.mulf %19, %24 : vector<2x16x16xf32>
    %cst_17 = arith.constant dense<0.000000e+00> : vector<2x16x32xf32>
    %26 = tpu.matmul %25, %10, %cst_17 {dimension_numbers = #tpu.dot_dimension_numbers<[2], [1], [1], [2], [0, 0, 0, 1, 1, 2], [0], [0]>} : vector<2x16x16xf32>, vector<2x16x32xf32>, vector<2x16x32xf32> -> vector<2x16x32xf32>
    %27 = vector.shape_cast %26 : vector<2x16x32xf32> to vector<2x2x8x32xf32>
    %c0_18 = arith.constant 0 : index
    %c0_19 = arith.constant 0 : index
    %c0_20 = arith.constant 0 : index
    %28 = vector.load %arg7[%c0_18, %c0_19, %c0_20] : memref<2x1x32xf32, #tpu.memory_space<vmem>>, vector<2x1x32xf32>
    %29 = vector.shape_cast %28 : vector<2x1x32xf32> to vector<1x2x1x32xf32>
    %30 = vector.broadcast %29 : vector<1x2x1x32xf32> to vector<2x2x8x32xf32>
    %31 = arith.mulf %27, %30 : vector<2x2x8x32xf32>
    %cst_21 = arith.constant dense<0.000000e+00> : vector<2x8x32xf32>
    %32 = vector.multi_reduction <add>, %31, %cst_21 [1] : vector<2x2x8x32xf32> to vector<2x8x32xf32>
    %33 = vector.shape_cast %32 : vector<2x8x32xf32> to vector<16x32xf32>
    %c0_22 = arith.constant 0 : index
    %c0_23 = arith.constant 0 : index
    %34 = vector.load %arg5[%c0_22, %c0_23] : memref<32x32xf32, #tpu.memory_space<vmem>>, vector<32x32xf32>
    %cst_24 = arith.constant dense<0.000000e+00> : vector<16x32xf32>
    %35 = tpu.matmul %33, %34, %cst_24 {dimension_numbers = #tpu.dot_dimension_numbers<[1], [0], [0], [1], [0, 0, 1, 1], [], []>} : vector<16x32xf32>, vector<32x32xf32>, vector<16x32xf32> -> vector<16x32xf32>
    %c0_25 = arith.constant 0 : index
    %c0_26 = arith.constant 0 : index
    %36 = vector.load %arg6[%c0_25, %c0_26] : memref<1x32xf32, #tpu.memory_space<vmem>>, vector<1x32xf32>
    %37 = vector.broadcast %36 : vector<1x32xf32> to vector<16x32xf32>
    %38 = arith.addf %35, %37 : vector<16x32xf32>
    %39 = vector.shape_cast %38 : vector<16x32xf32> to vector<2x8x32xf32>
    %c0_27 = arith.constant 0 : index
    %c0_28 = arith.constant 0 : index
    %c0_29 = arith.constant 0 : index
    %40 = vector.load %arg9[%c0_27, %c0_28, %c0_29] : memref<2x8x32xf32, #tpu.memory_space<vmem>>, vector<2x8x32xf32>
    tpu.vector_store %arg9[%c0_27, %c0_28, %c0_29], %39 {strides = array<i32>} : memref<2x8x32xf32, #tpu.memory_space<vmem>>, vector<2x8x32xf32>,
    return
  }
  func.func @transform_0(%arg0: i32) -> (i32, i32, i32) {
    %c0_i32 = arith.constant 0 : i32
    %c0_i32_0 = arith.constant 0 : i32
    %c0_i32_1 = arith.constant 0 : i32
    return %arg0, %c0_i32, %c0_i32_0 : i32, i32, i32
  }
  func.func @transform_1(%arg0: i32) -> (i32, i32) {
    %c0_i32 = arith.constant 0 : i32
    %c0_i32_0 = arith.constant 0 : i32
    %c0_i32_1 = arith.constant 0 : i32
    return %c0_i32, %c0_i32_0 : i32, i32
  }
  func.func @transform_2(%arg0: i32) -> (i32, i32) {
    %c0_i32 = arith.constant 0 : i32
    %c0_i32_0 = arith.constant 0 : i32
    %c0_i32_1 = arith.constant 0 : i32
    return %c0_i32, %c0_i32_0 : i32, i32
  }
  func.func @transform_3(%arg0: i32) -> (i32, i32) {
    %c0_i32 = arith.constant 0 : i32
    %c0_i32_0 = arith.constant 0 : i32
    %c0_i32_1 = arith.constant 0 : i32
    return %c0_i32, %c0_i32_0 : i32, i32
  }
  func.func @transform_4(%arg0: i32) -> (i32, i32) {
    %c0_i32 = arith.constant 0 : i32
    %c0_i32_0 = arith.constant 0 : i32
    %c0_i32_1 = arith.constant 0 : i32
    return %c0_i32, %c0_i32_0 : i32, i32
  }
  func.func @transform_5(%arg0: i32) -> (i32, i32) {
    %c0_i32 = arith.constant 0 : i32
    %c0_i32_0 = arith.constant 0 : i32
    %c0_i32_1 = arith.constant 0 : i32
    return %c0_i32, %c0_i32_0 : i32, i32
  }
  func.func @transform_6(%arg0: i32) -> (i32, i32, i32) {
    %c0_i32 = arith.constant 0 : i32
    %c0_i32_0 = arith.constant 0 : i32
    %c0_i32_1 = arith.constant 0 : i32
    %c0_i32_2 = arith.constant 0 : i32
    return %c0_i32, %c0_i32_0, %c0_i32_1 : i32, i32, i32
  }
  func.func @transform_7(%arg0: i32) -> (i32, i32) {
    %c0_i32 = arith.constant 0 : i32
    %c0_i32_0 = arith.constant 0 : i32
    %c0_i32_1 = arith.constant 0 : i32
    return %c0_i32, %c0_i32_0 : i32, i32
  }
  func.func @transform_8(%arg0: i32) -> (i32, i32, i32) {
    %c0_i32 = arith.constant 0 : i32
    %c0_i32_0 = arith.constant 0 : i32
    %c0_i32_1 = arith.constant 0 : i32
    return %arg0, %c0_i32, %c0_i32_0 : i32, i32, i32
  }
}

</mosaic_0001>

<bundles_post_ra>
// kernel: tpu_custom_call.1
= control target key start
LH: loop header
LB: loop body
LE: loop exit
PB: predicated region body
PF: predicated region fallthrough
CT: control target
= control target key end

     0   :  { %13 = vsyncpa [#allocation4], 0  ;;  %s1200_s0 = inlined_call_operand.hbm [shape: f32[2,16,32], index: 0, kind: input, shape index: {}]   ;;  %s1201_s1 = inlined_call_operand.hbm [shape: f32[16,32], index: 1, kind: input, shape index: {}]   ;;  %s1202_s2 = inlined_call_operand.hbm [shape: f32[32,64], index: 2, kind: input, shape index: {}]   ;;  %s1203_s3 = inlined_call_operand.vmem [shape: f32[1,64], index: 3, kind: input, shape index: {}]   ;;  %s1204_s4 = inlined_call_operand.hbm [shape: f32[32,32], index: 4, kind: input, shape index: {}]   ;;  %s1205_s5 = inlined_call_operand.vmem [shape: f32[1,32], index: 5, kind: input, shape index: {}]   ;;  %s1206_s6 = inlined_call_operand.vmem [shape: f32[2,1,32], index: 6, kind: input, shape index: {}]   ;;  %s1207_s7 = inlined_call_operand.vmem [shape: f32[1,16], index: 7, kind: input, shape index: {}]   ;;  %s1208_s8 = inlined_call_operand.hbm [shape: f32[2,8,32], index: 8, kind: output, shape index: {}]  }
   0x1   :  { %14 = vsyncpa [#allocation7], 0 }
   0x2   :  { %15 = vsyncpa [#allocation10], 0 }
   0x3   :  { %16 = vsyncpa [#allocation5], 0  ;;  %s1016_s27 = smov [#allocation6]   ;;  %s1017_s29 = smov [#allocation3]  }
   0x4   :  { %s34_s28 = sshll.u32 %s1016_s27, 4  ;;  %s22_s30 = sshll.u32 %s1017_s29, 4  ;;  %s35_s28 = int_to_ptr.vmem [resolvable:$true] %s34_s28  ;;  %s1069_s30 = int_to_ptr.vmem [resolvable:$true] %s22_s30 }
   0x5   :  { %s898_s11 = scalar_lea.hbm %s1201_s1, 256 }
   0x6   :  { %p899_p0 = scmp.ne.s32.totalorder %s1201_s1, %s898_s11  ;;  %p902_p1 = scmp.lt.u32.totalorder %s898_s11, %s1201_s1 }
   0x8   :  { %p904_p2 = pnand %p902_p1, %p899_p0 }
   0xa   :  { %907 = shalt.err (!%p904_p2)
}
   0xb   :  { %s908_s15 = scalar_lea.vmem %s35_s28, 256  ;;  %p913_p4 = scmp.lt.s32.totalorder %s35_s28, %s35_s28 }
   0xc   :  { %p909_p3 = scmp.ne.s32.totalorder %s35_s28, %s908_s15  ;;  %p914_p5 = scmp.lt.s32.totalorder %s908_s15, %s908_s15 }
   0xe   :  { %p915_p6 = por %p914_p5, %p913_p4 }
  0x10   :  { %p916_p7 = pnand %p915_p6, %p909_p3 }
  0x12   :  { %919 = shalt.err (!%p916_p7)
}
  0x13   :  { %s1018_s16 = smov 128   ;;  %s1019_s17 = smov 8  }
  0x14   :  { %40 = dma.hbm_to_vmem [thread:$0]  %s1201_s1, 256, %s35_s28, [#allocation7], %s1018_s16, %s1018_s16, %s1019_s17  }
  0x15   :  { %s920_s22 = scalar_lea.hbm %s1200_s0, 512 }
  0x16   :  { %p921_p8 = scmp.ne.s32.totalorder %s1200_s0, %s920_s22  ;;  %p924_p9 = scmp.lt.u32.totalorder %s920_s22, %s1200_s0 }
  0x18   :  { %p926_p10 = pnand %p924_p9, %p921_p8 }
  0x1a   :  { %929 = shalt.err (!%p926_p10)
}
  0x1b   :  { %s930_s27 = scalar_lea.vmem %s1069_s30, 512  ;;  %p935_p12 = scmp.lt.s32.totalorder %s1069_s30, %s1069_s30 }
  0x1c   :  { %p931_p11 = scmp.ne.s32.totalorder %s1069_s30, %s930_s27  ;;  %p936_p13 = scmp.lt.s32.totalorder %s930_s27, %s930_s27 }
  0x1e   :  { %p937_p0 = por %p936_p13, %p935_p12 }
  0x20   :  { %p938_p1 = pnand %p937_p0, %p931_p11 }
  0x22   :  { %941 = shalt.err (!%p938_p1)
}
  0x23   :  { %28 = dma.hbm_to_vmem [thread:$0]  %s1200_s0, 512, %s1069_s30, [#allocation4], %s1018_s16, %s1018_s16, %s1019_s17  }
  0x24   :  { %s1020_s29 = smov [#allocation8]   ;;  %s1021_s10 = smov [#allocation9]  }
  0x25   :  { %s46_s9 = sshll.u32 %s1020_s29, 4  ;;  %s60_s11 = sshll.u32 %s1021_s10, 4  ;;  %s47_s9 = int_to_ptr.vmem [resolvable:$true] %s46_s9  ;;  %s1106_s11 = int_to_ptr.vmem [resolvable:$true] %s60_s11 }
  0x26   :  { %s942_s13 = scalar_lea.hbm %s1202_s2, 512 }
  0x27   :  { %p943_p2 = scmp.ne.s32.totalorder %s1202_s2, %s942_s13  ;;  %p946_p3 = scmp.lt.u32.totalorder %s942_s13, %s1202_s2 }
  0x29   :  { %p948_p4 = pnand %p946_p3, %p943_p2 }
  0x2b   :  { %951 = shalt.err (!%p948_p4)
}
  0x2c   :  { %s952_s0 = scalar_lea.vmem %s47_s9, 512  ;;  %p957_p6 = scmp.lt.s32.totalorder %s47_s9, %s47_s9 }
  0x2d   :  { %p953_p5 = scmp.ne.s32.totalorder %s47_s9, %s952_s0  ;;  %p958_p7 = scmp.lt.s32.totalorder %s952_s0, %s952_s0 }
  0x2f   :  { %p959_p8 = por %p958_p7, %p957_p6 }
  0x31   :  { %p960_p9 = pnand %p959_p8, %p953_p5 }
  0x33   :  { %963 = shalt.err (!%p960_p9)
}
  0x34   :  { %52 = dma.hbm_to_vmem [thread:$0]  %s1202_s2, 512, %s47_s9, [#allocation7], %s1018_s16, %s1018_s16, %s1019_s17  }
  0x35   :  { %s964_s23 = scalar_lea.hbm %s1204_s4, 512 }
  0x36   :  { %p965_p10 = scmp.ne.s32.totalorder %s1204_s4, %s964_s23  ;;  %p968_p11 = scmp.lt.u32.totalorder %s964_s23, %s1204_s4 }
  0x38   :  { %p970_p12 = pnand %p968_p11, %p965_p10 }
  0x3a   :  { %973 = shalt.err (!%p970_p12)
}
  0x3b   :  { %s974_s1 = scalar_lea.vmem %s1106_s11, 512  ;;  %p979_p0 = scmp.lt.s32.totalorder %s1106_s11, %s1106_s11 }
  0x3c   :  { %p975_p13 = scmp.ne.s32.totalorder %s1106_s11, %s974_s1  ;;  %p980_p1 = scmp.lt.s32.totalorder %s974_s1, %s974_s1 }
  0x3e   :  { %p981_p2 = por %p980_p1, %p979_p0 }
  0x40   :  { %p982_p3 = pnand %p981_p2, %p975_p13 }
  0x42   :  { %985 = shalt.err (!%p982_p3)
}
  0x43   :  { %66 = dma.hbm_to_vmem [thread:$0]  %s1204_s4, 512, %s1106_s11, [#allocation10], %s1018_s16, %s1018_s16, %s1019_s17  }
  0x44   :  { %1008 = dma.done.wait [#allocation4], 512  }
  0x45   :  { %1009 = vsyncadd [#allocation4], 4294966784 }
  0x46   :  { %1010 = dma.done.wait [#allocation7], 768  }
  0x47   :  { %1011 = vsyncadd [#allocation7], 4294966528 }
  0x48   :  { %1012 = dma.done.wait [#allocation10], 512  }
  0x49   :  { %1013 = vsyncadd [#allocation10], 4294966784  ;;  %vm100_vm0 = vcmask 261120   ;;  %v89_v0 = vld [vmem:[#allocation8] sm:$0xff]  ;;  %v90_v1 = vld [vmem:[#allocation8 + $0x8] sm:$0xff]  ;;  %vm198_vm2 = vcmask 523264  }
  0x4a   :  { %v91_v2 = vld [vmem:[#allocation8 + $0x10] sm:$0xff]  ;;  %v833_v3 = vpack.c.bf16 %v90_v1, %v89_v0  ;;  %v92_v4 = vld [vmem:[#allocation8 + $0x18] sm:$0xff]  ;;  %v87_v8 = vld [vmem:[#allocation3 + $0x10] sm:$0xff]  ;;  %vm376_vm3 = vcmask 130048   ;;  %s1023_s13 = smov [#allocation11]  }
  0x4b   :  { %v85_v5 = vld [vmem:[#allocation3] sm:$0xff]  ;;  %v837_v6 = vpack.c.bf16 %v92_v4, %v91_v2  ;;  %v86_v7 = vld [vmem:[#allocation3 + $0x8] sm:$0xff]  ;;  %v88_v9 = vld [vmem:[#allocation3 + $0x18] sm:$0xff]  ;;  %s722_s14 = sshll.u32 %s1023_s13, 4  ;;  %s723_s14 = int_to_ptr.vmem [resolvable:$true] %s722_s14 }
  0x4c   :  { %792 = vmatprep.mubr.msk.f32.mxu0 %vm100_vm0, %v85_v5  ;;  %834 = vmatprep.subr.bf16.mxu0 %v833_v3  ;;  %v207_v10 = vld [vmem:[#allocation6] sm:$0xff]  ;;  %v208_v11 = vld [vmem:[#allocation6 + $0x8] sm:$0xff]  ;;  %vm842_vm1 = vmpackc.low %vm100_vm0, %vm100_vm0  ;;  %s986_s15 = scalar_lea.vmem %s723_s14, 256  ;;  %p991_p5 = scmp.lt.s32.totalorder %s723_s14, %s723_s14 }
  0x4d   :  { %836 = vmatpush3.bf16.msra.mxu0 %v833_v3  ;;  %v841_v12 = vpack.c.bf16 %v208_v11, %v207_v10  ;;  %v736_v13 = vld [vmem:[%s1203_s3] ss:$0 sm:$0xff]  ;;  %s1022_s3 = smov 96   ;;  %p987_p4 = scmp.ne.s32.totalorder %s723_s14, %s986_s15 }
  0x4e   :  { %838 = vmatprep.subr.bf16.mxu0 %v837_v6  ;;  %p992_p6 = scmp.lt.s32.totalorder %s986_s15, %s986_s15 }
  0x4f   :  { %843 = vmatprep.subr.msk.bf16.mxu1 %vm842_vm1, %v841_v12 }
  0x50   :  { %846 = vmatpush3.bf16.xpose.msk.msra.mxu1 %vm842_vm1, %v841_v12  ;;  %p993_p7 = por %p992_p6, %p991_p5 }
  0x51   :  { %840 = vmatpush3.bf16.msra.mxu0 %v837_v6 }
  0x52   :  { %p994_p8 = pnand %p993_p7, %p987_p4 }
  0x54   :  { %793 = vmatmul.mubr.msk.f32.vlgmr.msra.gmra.mrb[0].mxu0 %vm100_vm0, %v86_v7 }
  0x55   :  { %795 = vmatprep.mubr.msk.f32.mxu0 %vm100_vm0, %v87_v8 }
  0x58   :  { %796 = vmatmul.mubr.msk.f32.gmra.mrb[2].mxu0 %vm100_vm0, %v88_v9 }
 0x127   :  { %v794_v14 = vpop.f32.mrb[0].mxu0 }
 0x128   :  { %v185_v15 = vadd.f32 %v794_v14, %v736_v13  ;;  %v179_v16 = vpop.f32.mrb[1].mxu0 }
 0x129   :  { %v180_v17 = vadd.f32 %v736_v13, %v179_v16  ;;  %v623_v16 = vld [vmem:[#allocation9] sm:$0xff] }
 0x12a   :  { %200 = vst.msk [vmem:[#allocation2 + $0x8] sm:$0xff] %vm198_vm2, %v185_v15 }
 0x12b   :  { %199 = vst.msk [vmem:[#allocation2] sm:$0xff] %vm198_vm2, %v180_v17  ;;  %v797_v18 = vpop.f32.mrb[2].mxu0  ;;  %v624_v17 = vld [vmem:[#allocation9 + $0x8] sm:$0xff] }
 0x12c   :  { %v195_v19 = vadd.f32 %v797_v18, %v736_v13  ;;  %v189_v20 = vpop.f32.mrb[3].mxu0  ;;  %v855_v18 = vpack.c.bf16 %v624_v17, %v623_v16 }
 0x12d   :  { %v190_v21 = vadd.f32 %v736_v13, %v189_v20  ;;  %v626_v20 = vld [vmem:[#allocation9 + $0x18] sm:$0xff] }
 0x12e   :  { %202 = vst.msk [vmem:[#allocation2 + $0x18] sm:$0xff] %vm198_vm2, %v195_v19  ;;  %856 = vmatprep.subr.bf16.mxu0 %v855_v18  ;;  %v625_v19 = vld [vmem:[#allocation9 + $0x10] sm:$0xff] }
 0x12f   :  { %201 = vst.msk [vmem:[#allocation2 + $0x10] sm:$0xff] %vm198_vm2, %v190_v21  ;;  %858 = vmatpush3.bf16.msra.mxu0 %v855_v18  ;;  %v859_v21 = vpack.c.bf16 %v626_v20, %v625_v19 }
 0x131   :  { %v204_v22 = vld [vmem:[#allocation2 + $0x8] sm:$0xff]  ;;  %860 = vmatprep.subr.bf16.mxu0 %v859_v21 }
 0x132   :  { %v203_v23 = vld [vmem:[#allocation2] sm:$0xff] }
 0x133   :  { %v872_v24 = vpack.i.bf16 %v204_v22, %v203_v23  ;;  %802 = vmatprep.mubr.msk.f32.mxu1 %vm100_vm0, %v203_v23  ;;  %862 = vmatpush3.bf16.msra.mxu0 %v859_v21  ;;  %v751_v23 = vld [vmem:[%s1206_s6] ss:$0 sm:$0xff] }
 0x134   :  { %803 = vmatmul.mubr.msk.f32.vlgmr.msra.gmra.mrb[0].mxu1 %vm100_vm0, %v204_v22  ;;  %v752_v22 = vld [vmem:[%s1206_s6 + $0x1] ss:$0 sm:$0xff] }
 0x135   :  { %v206_v25 = vld [vmem:[#allocation2 + $0x18] sm:$0xff] }
 0x136   :  { %v205_v26 = vld [vmem:[#allocation2 + $0x10] sm:$0xff] }
 0x137   :  { %805 = vmatprep.mubr.msk.f32.mxu1 %vm100_vm0, %v205_v26  ;;  %v877_v27 = vpack.i.bf16 %v206_v25, %v205_v26 }
 0x138   :  { %806 = vmatmul.mubr.msk.f32.gmra.mrb[2].mxu1 %vm100_vm0, %v206_v25 }
 0x207   :  { %v804_v28 = vpop.f32.mrb[0].mxu1 }
 0x208   :  { %v293_v29 = vpop.f32.mrb[1].mxu1 }
 0x209   :  { %312 = vxpose.xlu0.b32.start [1/2] (short) (narrow) %v293_v29, 16 }
 0x20b   :  { %v807_v30 = vpop.f32.mrb[2].mxu1 }
 0x20c   :  { %v303_v31 = vpop.f32.mrb[3].mxu1 }
 0x20d   :  { %313 = vxpose.xlu0.b32.end [2/2] (short) (narrow) %v804_v28, 16  ;;  %344 = vxpose.xlu1.b32.start [1/2] (short) (narrow) %v303_v31, 16 }
 0x211   :  { %345 = vxpose.xlu1.b32.end [2/2] (short) (narrow) %v807_v30, 16 }
 0x289   :  { %v328_v32 = vpop.trf.xlu0 }
 0x28a   :  { %v377_v33 = vsel %vm376_vm3, %v328_v32, -inf }
 0x28b   :  { %378 = vmax.xlane.f32.xlu0 %v377_v33 }
 0x28d   :  { %v329_v34 = vpop.trf.xlu0  ;;  %v360_v35 = vpop.trf.xlu1 }
 0x28e   :  { %v380_v36 = vsel %vm376_vm3, %v329_v34, -inf  ;;  %v383_v37 = vsel %vm376_vm3, %v360_v35, -inf }
 0x28f   :  { %381 = vmax.xlane.f32.xlu1 %v380_v36 }
 0x291   :  { %v361_v38 = vpop.trf.xlu1 }
 0x292   :  { %v386_v39 = vsel %vm376_vm3, %v361_v38, -inf }
 0x293   :  { %384 = vmax.xlane.f32.xlu1 %v383_v37 }
 0x297   :  { %387 = vmax.xlane.f32.xlu1 %v386_v39 }
 0x318   :  { %v379_v40 = vpop.xlane.xlu0 %378 }
 0x319   :  { %v389_v41 = vsub.f32 %v328_v32, %v379_v40 }
 0x31b   :  { %v393_v42 = vmul.f32 1.442695, %v389_v41 }
 0x31c   :  { %v382_v43 = vpop.xlane.xlu1 %381 }
 0x31d   :  { %882 = vpow2.f32 %v393_v42  ;;  %v390_v44 = vsub.f32 %v329_v34, %v382_v43 }
 0x31f   :  { %v395_v45 = vmul.f32 1.442695, %v390_v44 }
 0x320   :  { %v385_v46 = vpop.xlane.xlu1 %384 }
 0x321   :  { %884 = vpow2.f32 %v395_v45  ;;  %v391_v47 = vsub.f32 %v360_v35, %v385_v46 }
 0x323   :  { %v397_v48 = vmul.f32 1.442695, %v391_v47 }
 0x324   :  { %v388_v49 = vpop.xlane.xlu1 %387 }
 0x325   :  { %886 = vpow2.f32 %v397_v48  ;;  %v392_v50 = vsub.f32 %v361_v38, %v388_v49  ;;  %v753_v38 = vld [vmem:[%s1205_s5] ss:$0 sm:$0xff] }
 0x327   :  { %v883_v51 = vpop.eup %882  ;;  %v399_v52 = vmul.f32 1.442695, %v392_v50 }
 0x328   :  { %v401_v53 = vsel %vm376_vm3, %v883_v51, 0.0 }
 0x329   :  { %888 = vpow2.f32 %v399_v52  ;;  %402 = vadd.xlane.f32.xlu0 %v401_v53 }
 0x32b   :  { %v885_v54 = vpop.eup %884 }
 0x32c   :  { %v404_v55 = vsel %vm376_vm3, %v885_v54, 0.0 }
 0x32d   :  { %405 = vadd.xlane.f32.xlu1 %v404_v55 }
 0x32f   :  { %v887_v56 = vpop.eup %886 }
 0x330   :  { %v407_v57 = vsel %vm376_vm3, %v887_v56, 0.0 }
 0x331   :  { %408 = vadd.xlane.f32.xlu0 %v407_v57 }
 0x333   :  { %v889_v58 = vpop.eup %888 }
 0x334   :  { %v410_v59 = vsel %vm376_vm3, %v889_v58, 0.0 }
 0x335   :  { %411 = vadd.xlane.f32.xlu1 %v410_v59 }
 0x346   :  { %878 = vrot.lane.b32.xlu1 %v877_v27, %s1022_s3 }
 0x347   :  { %873 = vrot.lane.b32.xlu0 %v872_v24, %s1022_s3 }
 0x3b6   :  { %v403_v60 = vpop.xlane.xlu0 %402 }
 0x3b7   :  { %890 = vrcp.f32 %v403_v60 }
 0x3ba   :  { %v406_v61 = vpop.xlane.xlu1 %405 }
 0x3bb   :  { %892 = vrcp.f32 %v406_v61 }
 0x3be   :  { %v409_v62 = vpop.xlane.xlu0 %408 }
 0x3bf   :  { %894 = vrcp.f32 %v409_v62 }
 0x3c1   :  { %v891_v63 = vpop.eup %890 }
 0x3c2   :  { %v874_v0 = vpop.permute.xlu0 %873  ;;  %v412_v1 = vpop.xlane.xlu1 %411  ;;  %v421_v2 = vmul.f32 %v891_v63, %v883_v51 }
 0x3c3   :  { %v876_v3 = vunpack.i.h.bf16 %v874_v0  ;;  %v875_v4 = vunpack.i.l.bf16 %v874_v0  ;;  %896 = vrcp.f32 %v412_v1 }
 0x3c4   :  { %812 = vmatprep.mubr.msk.f32.mxu1 %vm376_vm3, %v421_v2 }
 0x3c5   :  { %v847_v5 = vpack.c.bf16 %v876_v3, %v875_v4  ;;  %v893_v6 = vpop.eup %892 }
 0x3c6   :  { %v879_v7 = vpop.permute.xlu1 %878  ;;  %v422_v11 = vmul.f32 %v893_v6, %v885_v54 }
 0x3c7   :  { %v881_v8 = vunpack.i.h.bf16 %v879_v7  ;;  %v880_v9 = vunpack.i.l.bf16 %v879_v7  ;;  %848 = vmatprep.subr.bf16.mxu1 %v847_v5 }
 0x3c8   :  { %850 = vmatpush3.bf16.msra.mxu1 %v847_v5 }
 0x3c9   :  { %v895_v10 = vpop.eup %894  ;;  %v851_v12 = vpack.c.bf16 %v881_v8, %v880_v9 }
 0x3ca   :  { %v423_v13 = vmul.f32 %v895_v10, %v887_v56 }
 0x3cb   :  { %813 = vmatmul.mubr.msk.f32.vlgmr.msra.gmra.mrb[4].mxu1 %vm376_vm3, %v422_v11  ;;  %852 = vmatprep.subr.bf16.mxu1 %v851_v12 }
 0x3cc   :  { %854 = vmatpush3.bf16.msra.mxu1 %v851_v12  ;;  %819 = vmatprep.mubr.msk.f32.mxu1 %vm376_vm3, %v423_v13 }
 0x3cd   :  { %v897_v14 = vpop.eup %896 }
 0x3ce   :  { %v424_v15 = vmul.f32 %v897_v14, %v889_v58 }
 0x3d0   :  { %820 = vmatmul.mubr.msk.f32.vlgmr.msra.gmra.mrb[6].mxu1 %vm376_vm3, %v424_v15 }
 0x49e   :  { %v814_v24 = vpop.f32.mrb[4].mxu1 }
 0x49f   :  { %v614_v25 = vmul.f32 %v814_v24, %v752_v22  ;;  %v503_v26 = vpop.f32.mrb[5].mxu1 }
 0x4a0   :  { %v613_v27 = vmul.f32 %v751_v23, %v503_v26 }
 0x4a1   :  { %v618_v28 = vsel %vm100_vm0, %v614_v25, 0.0 }
 0x4a2   :  { %v617_v29 = vsel %vm100_vm0, %v613_v27, 0.0 }
 0x4a3   :  { %v619_v30 = vadd.f32 %v618_v28, %v617_v29  ;;  %v821_v31 = vpop.f32.mrb[6].mxu1 }
 0x4a4   :  { %v616_v32 = vmul.f32 %v821_v31, %v752_v22  ;;  %v590_v33 = vpop.f32.mrb[7].mxu1 }
 0x4a5   :  { %v615_v34 = vmul.f32 %v751_v23, %v590_v33  ;;  %830 = vmatprep.mubr.msk.f32.mxu0 %vm100_vm0, %v619_v30 }
 0x4a6   :  { %v621_v35 = vsel %vm100_vm0, %v616_v32, 0.0 }
 0x4a7   :  { %v620_v36 = vsel %vm100_vm0, %v615_v34, 0.0 }
 0x4a8   :  { %v622_v37 = vadd.f32 %v621_v35, %v620_v36 }
 0x4aa   :  { %831 = vmatmul.mubr.msk.f32.vlgmr.msra.gmra.mrb[4].mxu0 %vm100_vm0, %v622_v37 }
 0x57d   :  { %v832_v39 = vpop.f32.mrb[4].mxu0 }
 0x57e   :  { %v712_v40 = vadd.f32 %v832_v39, %v753_v38  ;;  %v706_v41 = vpop.f32.mrb[5].mxu0 }
 0x57f   :  { %v707_v42 = vadd.f32 %v753_v38, %v706_v41 }
 0x580   :  { %716 = vst.msk [vmem:[#allocation11 + $0x8] sm:$0xff] %vm100_vm0, %v712_v40 }
 0x581   :  { %715 = vst.msk [vmem:[#allocation11] sm:$0xff] %vm100_vm0, %v707_v42 }
 0x582   :  { %997 = shalt.err (!%p994_p8)
}
 0x583   :  { %s998_s19 = scalar_lea.hbm %s1208_s8, 256 }
 0x584   :  { %p999_p9 = scmp.ne.s32.totalorder %s1208_s8, %s998_s19  ;;  %p1002_p10 = scmp.lt.u32.totalorder %s998_s19, %s1208_s8 }
 0x586   :  { %p1004_p11 = pnand %p1002_p10, %p999_p9 }
 0x588   :  { %1007 = shalt.err (!%p1004_p11)
}
 0x589   :  { %728 = dma.vmem_to_hbm [thread:$0]  %s723_s14, 256, %s1208_s8, [#allocation5], %s1018_s16, %s1018_s16, %s1019_s17  }
 0x58a   :  { %1014 = dma.done.wait [#allocation5], 256  }
 0x58b   :  { %1015 = vsyncadd [#allocation5], 4294967040 }
 0x58c   :  { %732 = vsyncpa [#allocation4], 1 }
 0x58d   :  { %733 = vsyncpa [#allocation7], 1 }
 0x58e   :  { %734 = vsyncpa [#allocation10], 1 }
 0x58f   :  { %735 = vsyncpa [#allocation5], 1 }

// kernel: tpu_custom_call.1
= control target key start
LH: loop header
LB: loop body
LE: loop exit
PB: predicated region body
PF: predicated region fallthrough
CT: control target
= control target key end

     0   :  { %13 = vsyncpa [#allocation4], 0  ;;  %s1200_s0 = inlined_call_operand.hbm [shape: f32[2,16,32], index: 0, kind: input, shape index: {}]   ;;  %s1201_s1 = inlined_call_operand.hbm [shape: f32[16,32], index: 1, kind: input, shape index: {}]   ;;  %s1202_s2 = inlined_call_operand.hbm [shape: f32[32,64], index: 2, kind: input, shape index: {}]   ;;  %s1203_s3 = inlined_call_operand.vmem [shape: f32[1,64], index: 3, kind: input, shape index: {}]   ;;  %s1204_s4 = inlined_call_operand.hbm [shape: f32[32,32], index: 4, kind: input, shape index: {}]   ;;  %s1205_s5 = inlined_call_operand.vmem [shape: f32[1,32], index: 5, kind: input, shape index: {}]   ;;  %s1206_s6 = inlined_call_operand.vmem [shape: f32[2,1,32], index: 6, kind: input, shape index: {}]   ;;  %s1207_s7 = inlined_call_operand.vmem [shape: f32[1,16], index: 7, kind: input, shape index: {}]   ;;  %s1208_s8 = inlined_call_operand.hbm [shape: f32[2,8,32], index: 8, kind: output, shape index: {}]  }
   0x1   :  { %14 = vsyncpa [#allocation7], 0 }
   0x2   :  { %15 = vsyncpa [#allocation10], 0 }
   0x3   :  { %16 = vsyncpa [#allocation5], 0  ;;  %s1016_s27 = smov [#allocation6]   ;;  %s1017_s29 = smov [#allocation3]  }
   0x4   :  { %s34_s28 = sshll.u32 %s1016_s27, 4  ;;  %s22_s30 = sshll.u32 %s1017_s29, 4  ;;  %s35_s28 = int_to_ptr.vmem [resolvable:$true] %s34_s28  ;;  %s1069_s30 = int_to_ptr.vmem [resolvable:$true] %s22_s30 }
   0x5   :  { %s898_s11 = scalar_lea.hbm %s1201_s1, 256 }
   0x6   :  { %p899_p0 = scmp.ne.s32.totalorder %s1201_s1, %s898_s11  ;;  %p902_p1 = scmp.lt.u32.totalorder %s898_s11, %s1201_s1 }
   0x8   :  { %p904_p2 = pnand %p902_p1, %p899_p0 }
   0xa   :  { %907 = shalt.err (!%p904_p2)
}
   0xb   :  { %s908_s15 = scalar_lea.vmem %s35_s28, 256  ;;  %p913_p4 = scmp.lt.s32.totalorder %s35_s28, %s35_s28 }
   0xc   :  { %p909_p3 = scmp.ne.s32.totalorder %s35_s28, %s908_s15  ;;  %p914_p5 = scmp.lt.s32.totalorder %s908_s15, %s908_s15 }
   0xe   :  { %p915_p6 = por %p914_p5, %p913_p4 }
  0x10   :  { %p916_p7 = pnand %p915_p6, %p909_p3 }
  0x12   :  { %919 = shalt.err (!%p916_p7)
}
  0x13   :  { %s1018_s16 = smov 128   ;;  %s1019_s17 = smov 8  }
  0x14   :  { %40 = dma.hbm_to_vmem [thread:$0]  %s1201_s1, 256, %s35_s28, [#allocation7], %s1018_s16, %s1018_s16, %s1019_s17  }
  0x15   :  { %s920_s22 = scalar_lea.hbm %s1200_s0, 512 }
  0x16   :  { %p921_p8 = scmp.ne.s32.totalorder %s1200_s0, %s920_s22  ;;  %p924_p9 = scmp.lt.u32.totalorder %s920_s22, %s1200_s0 }
  0x18   :  { %p926_p10 = pnand %p924_p9, %p921_p8 }
  0x1a   :  { %929 = shalt.err (!%p926_p10)
}
  0x1b   :  { %s930_s27 = scalar_lea.vmem %s1069_s30, 512  ;;  %p935_p12 = scmp.lt.s32.totalorder %s1069_s30, %s1069_s30 }
  0x1c   :  { %p931_p11 = scmp.ne.s32.totalorder %s1069_s30, %s930_s27  ;;  %p936_p13 = scmp.lt.s32.totalorder %s930_s27, %s930_s27 }
  0x1e   :  { %p937_p0 = por %p936_p13, %p935_p12 }
  0x20   :  { %p938_p1 = pnand %p937_p0, %p931_p11 }
  0x22   :  { %941 = shalt.err (!%p938_p1)
}
  0x23   :  { %28 = dma.hbm_to_vmem [thread:$0]  %s1200_s0, 512, %s1069_s30, [#allocation4], %s1018_s16, %s1018_s16, %s1019_s17  }
  0x24   :  { %s1020_s29 = smov [#allocation8]   ;;  %s1021_s10 = smov [#allocation9]  }
  0x25   :  { %s46_s9 = sshll.u32 %s1020_s29, 4  ;;  %s60_s11 = sshll.u32 %s1021_s10, 4  ;;  %s47_s9 = int_to_ptr.vmem [resolvable:$true] %s46_s9  ;;  %s1106_s11 = int_to_ptr.vmem [resolvable:$true] %s60_s11 }
  0x26   :  { %s942_s13 = scalar_lea.hbm %s1202_s2, 512 }
  0x27   :  { %p943_p2 = scmp.ne.s32.totalorder %s1202_s2, %s942_s13  ;;  %p946_p3 = scmp.lt.u32.totalorder %s942_s13, %s1202_s2 }
  0x29   :  { %p948_p4 = pnand %p946_p3, %p943_p2 }
  0x2b   :  { %951 = shalt.err (!%p948_p4)
}
  0x2c   :  { %s952_s0 = scalar_lea.vmem %s47_s9, 512  ;;  %p957_p6 = scmp.lt.s32.totalorder %s47_s9, %s47_s9 }
  0x2d   :  { %p953_p5 = scmp.ne.s32.totalorder %s47_s9, %s952_s0  ;;  %p958_p7 = scmp.lt.s32.totalorder %s952_s0, %s952_s0 }
  0x2f   :  { %p959_p8 = por %p958_p7, %p957_p6 }
  0x31   :  { %p960_p9 = pnand %p959_p8, %p953_p5 }
  0x33   :  { %963 = shalt.err (!%p960_p9)
}
  0x34   :  { %52 = dma.hbm_to_vmem [thread:$0]  %s1202_s2, 512, %s47_s9, [#allocation7], %s1018_s16, %s1018_s16, %s1019_s17  }
  0x35   :  { %s964_s23 = scalar_lea.hbm %s1204_s4, 512 }
  0x36   :  { %p965_p10 = scmp.ne.s32.totalorder %s1204_s4, %s964_s23  ;;  %p968_p11 = scmp.lt.u32.totalorder %s964_s23, %s1204_s4 }
  0x38   :  { %p970_p12 = pnand %p968_p11, %p965_p10 }
  0x3a   :  { %973 = shalt.err (!%p970_p12)
}
  0x3b   :  { %s974_s1 = scalar_lea.vmem %s1106_s11, 512  ;;  %p979_p0 = scmp.lt.s32.totalorder %s1106_s11, %s1106_s11 }
  0x3c   :  { %p975_p13 = scmp.ne.s32.totalorder %s1106_s11, %s974_s1  ;;  %p980_p1 = scmp.lt.s32.totalorder %s974_s1, %s974_s1 }
  0x3e   :  { %p981_p2 = por %p980_p1, %p979_p0 }
  0x40   :  { %p982_p3 = pnand %p981_p2, %p975_p13 }
  0x42   :  { %985 = shalt.err (!%p982_p3)
}
  0x43   :  { %66 = dma.hbm_to_vmem [thread:$0]  %s1204_s4, 512, %s1106_s11, [#allocation10], %s1018_s16, %s1018_s16, %s1019_s17  }
  0x44   :  { %1008 = dma.done.wait [#allocation4], 512  }
  0x45   :  { %1009 = vsyncadd [#allocation4], 4294966784 }
  0x46   :  { %1010 = dma.done.wait [#allocation7], 768  }
  0x47   :  { %1011 = vsyncadd [#allocation7], 4294966528 }
  0x48   :  { %1012 = dma.done.wait [#allocation10], 512  }
  0x49   :  { %1013 = vsyncadd [#allocation10], 4294966784  ;;  %vm100_vm0 = vcmask 261120   ;;  %v89_v0 = vld [vmem:[#allocation8] sm:$0xff]  ;;  %v90_v1 = vld [vmem:[#allocation8 + $0x8] sm:$0xff]  ;;  %vm198_vm2 = vcmask 523264  }
  0x4a   :  { %v91_v2 = vld [vmem:[#allocation8 + $0x10] sm:$0xff]  ;;  %v833_v3 = vpack.c.bf16 %v90_v1, %v89_v0  ;;  %v92_v4 = vld [vmem:[#allocation8 + $0x18] sm:$0xff]  ;;  %v87_v8 = vld [vmem:[#allocation3 + $0x10] sm:$0xff]  ;;  %vm376_vm3 = vcmask 130048   ;;  %s1023_s13 = smov [#allocation11]  }
  0x4b   :  { %v85_v5 = vld [vmem:[#allocation3] sm:$0xff]  ;;  %v837_v6 = vpack.c.bf16 %v92_v4, %v91_v2  ;;  %v86_v7 = vld [vmem:[#allocation3 + $0x8] sm:$0xff]  ;;  %v88_v9 = vld [vmem:[#allocation3 + $0x18] sm:$0xff]  ;;  %s722_s14 = sshll.u32 %s1023_s13, 4  ;;  %s723_s14 = int_to_ptr.vmem [resolvable:$true] %s722_s14 }
  0x4c   :  { %792 = vmatprep.mubr.msk.f32.mxu0 %vm100_vm0, %v85_v5  ;;  %834 = vmatprep.subr.bf16.mxu0 %v833_v3  ;;  %v207_v10 = vld [vmem:[#allocation6] sm:$0xff]  ;;  %v208_v11 = vld [vmem:[#allocation6 + $0x8] sm:$0xff]  ;;  %vm842_vm1 = vmpackc.low %vm100_vm0, %vm100_vm0  ;;  %s986_s15 = scalar_lea.vmem %s723_s14, 256  ;;  %p991_p5 = scmp.lt.s32.totalorder %s723_s14, %s723_s14 }
  0x4d   :  { %836 = vmatpush3.bf16.msra.mxu0 %v833_v3  ;;  %v841_v12 = vpack.c.bf16 %v208_v11, %v207_v10  ;;  %v736_v13 = vld [vmem:[%s1203_s3] ss:$0 sm:$0xff]  ;;  %s1022_s3 = smov 96   ;;  %p987_p4 = scmp.ne.s32.totalorder %s723_s14, %s986_s15 }
  0x4e   :  { %838 = vmatprep.subr.bf16.mxu0 %v837_v6  ;;  %p992_p6 = scmp.lt.s32.totalorder %s986_s15, %s986_s15 }
  0x4f   :  { %843 = vmatprep.subr.msk.bf16.mxu1 %vm842_vm1, %v841_v12 }
  0x50   :  { %846 = vmatpush3.bf16.xpose.msk.msra.mxu1 %vm842_vm1, %v841_v12  ;;  %p993_p7 = por %p992_p6, %p991_p5 }
  0x51   :  { %840 = vmatpush3.bf16.msra.mxu0 %v837_v6 }
  0x52   :  { %p994_p8 = pnand %p993_p7, %p987_p4 }
  0x54   :  { %793 = vmatmul.mubr.msk.f32.vlgmr.msra.gmra.mrb[0].mxu0 %vm100_vm0, %v86_v7 }
  0x55   :  { %795 = vmatprep.mubr.msk.f32.mxu0 %vm100_vm0, %v87_v8 }
  0x58   :  { %796 = vmatmul.mubr.msk.f32.gmra.mrb[2].mxu0 %vm100_vm0, %v88_v9 }
 0x127   :  { %v794_v14 = vpop.f32.mrb[0].mxu0 }
 0x128   :  { %v185_v15 = vadd.f32 %v794_v14, %v736_v13  ;;  %v179_v16 = vpop.f32.mrb[1].mxu0 }
 0x129   :  { %v180_v17 = vadd.f32 %v736_v13, %v179_v16  ;;  %v623_v16 = vld [vmem:[#allocation9] sm:$0xff] }
 0x12a   :  { %200 = vst.msk [vmem:[#allocation2 + $0x8] sm:$0xff] %vm198_vm2, %v185_v15 }
 0x12b   :  { %199 = vst.msk [vmem:[#allocation2] sm:$0xff] %vm198_vm2, %v180_v17  ;;  %v797_v18 = vpop.f32.mrb[2].mxu0  ;;  %v624_v17 = vld [vmem:[#allocation9 + $0x8] sm:$0xff] }
 0x12c   :  { %v195_v19 = vadd.f32 %v797_v18, %v736_v13  ;;  %v189_v20 = vpop.f32.mrb[3].mxu0  ;;  %v855_v18 = vpack.c.bf16 %v624_v17, %v623_v16 }
 0x12d   :  { %v190_v21 = vadd.f32 %v736_v13, %v189_v20  ;;  %v626_v20 = vld [vmem:[#allocation9 + $0x18] sm:$0xff] }
 0x12e   :  { %202 = vst.msk [vmem:[#allocation2 + $0x18] sm:$0xff] %vm198_vm2, %v195_v19  ;;  %856 = vmatprep.subr.bf16.mxu0 %v855_v18  ;;  %v625_v19 = vld [vmem:[#allocation9 + $0x10] sm:$0xff] }
 0x12f   :  { %201 = vst.msk [vmem:[#allocation2 + $0x10] sm:$0xff] %vm198_vm2, %v190_v21  ;;  %858 = vmatpush3.bf16.msra.mxu0 %v855_v18  ;;  %v859_v21 = vpack.c.bf16 %v626_v20, %v625_v19 }
 0x131   :  { %v204_v22 = vld [vmem:[#allocation2 + $0x8] sm:$0xff]  ;;  %860 = vmatprep.subr.bf16.mxu0 %v859_v21 }
 0x132   :  { %v203_v23 = vld [vmem:[#allocation2] sm:$0xff] }
 0x133   :  { %v872_v24 = vpack.i.bf16 %v204_v22, %v203_v23  ;;  %802 = vmatprep.mubr.msk.f32.mxu1 %vm100_vm0, %v203_v23  ;;  %862 = vmatpush3.bf16.msra.mxu0 %v859_v21  ;;  %v751_v23 = vld [vmem:[%s1206_s6] ss:$0 sm:$0xff] }
 0x134   :  { %803 = vmatmul.mubr.msk.f32.vlgmr.msra.gmra.mrb[0].mxu1 %vm100_vm0, %v204_v22  ;;  %v752_v22 = vld [vmem:[%s1206_s6 + $0x1] ss:$0 sm:$0xff] }
 0x135   :  { %v206_v25 = vld [vmem:[#allocation2 + $0x18] sm:$0xff] }
 0x136   :  { %v205_v26 = vld [vmem:[#allocation2 + $0x10] sm:$0xff] }
 0x137   :  { %805 = vmatprep.mubr.msk.f32.mxu1 %vm100_vm0, %v205_v26  ;;  %v877_v27 = vpack.i.bf16 %v206_v25, %v205_v26 }
 0x138   :  { %806 = vmatmul.mubr.msk.f32.gmra.mrb[2].mxu1 %vm100_vm0, %v206_v25 }
 0x207   :  { %v804_v28 = vpop.f32.mrb[0].mxu1 }
 0x208   :  { %v293_v29 = vpop.f32.mrb[1].mxu1 }
 0x209   :  { %312 = vxpose.xlu0.b32.start [1/2] (short) (narrow) %v293_v29, 16 }
 0x20b   :  { %v807_v30 = vpop.f32.mrb[2].mxu1 }
 0x20c   :  { %v303_v31 = vpop.f32.mrb[3].mxu1 }
 0x20d   :  { %313 = vxpose.xlu0.b32.end [2/2] (short) (narrow) %v804_v28, 16  ;;  %344 = vxpose.xlu1.b32.start [1/2] (short) (narrow) %v303_v31, 16 }
 0x211   :  { %345 = vxpose.xlu1.b32.end [2/2] (short) (narrow) %v807_v30, 16 }
 0x289   :  { %v328_v32 = vpop.trf.xlu0 }
 0x28a   :  { %v377_v33 = vsel %vm376_vm3, %v328_v32, -inf }
 0x28b   :  { %378 = vmax.xlane.f32.xlu0 %v377_v33 }
 0x28d   :  { %v329_v34 = vpop.trf.xlu0  ;;  %v360_v35 = vpop.trf.xlu1 }
 0x28e   :  { %v380_v36 = vsel %vm376_vm3, %v329_v34, -inf  ;;  %v383_v37 = vsel %vm376_vm3, %v360_v35, -inf }
 0x28f   :  { %381 = vmax.xlane.f32.xlu1 %v380_v36 }
 0x291   :  { %v361_v38 = vpop.trf.xlu1 }
 0x292   :  { %v386_v39 = vsel %vm376_vm3, %v361_v38, -inf }
 0x293   :  { %384 = vmax.xlane.f32.xlu1 %v383_v37 }
 0x297   :  { %387 = vmax.xlane.f32.xlu1 %v386_v39 }
 0x318   :  { %v379_v40 = vpop.xlane.xlu0 %378 }
 0x319   :  { %v389_v41 = vsub.f32 %v328_v32, %v379_v40 }
 0x31b   :  { %v393_v42 = vmul.f32 1.442695, %v389_v41 }
 0x31c   :  { %v382_v43 = vpop.xlane.xlu1 %381 }
 0x31d   :  { %882 = vpow2.f32 %v393_v42  ;;  %v390_v44 = vsub.f32 %v329_v34, %v382_v43 }
 0x31f   :  { %v395_v45 = vmul.f32 1.442695, %v390_v44 }
 0x320   :  { %v385_v46 = vpop.xlane.xlu1 %384 }
 0x321   :  { %884 = vpow2.f32 %v395_v45  ;;  %v391_v47 = vsub.f32 %v360_v35, %v385_v46 }
 0x323   :  { %v397_v48 = vmul.f32 1.442695, %v391_v47 }
 0x324   :  { %v388_v49 = vpop.xlane.xlu1 %387 }
 0x325   :  { %886 = vpow2.f32 %v397_v48  ;;  %v392_v50 = vsub.f32 %v361_v38, %v388_v49  ;;  %v753_v38 = vld [vmem:[%s1205_s5] ss:$0 sm:$0xff] }
 0x327   :  { %v883_v51 = vpop.eup %882  ;;  %v399_v52 = vmul.f32 1.442695, %v392_v50 }
 0x328   :  { %v401_v53 = vsel %vm376_vm3, %v883_v51, 0.0 }
 0x329   :  { %888 = vpow2.f32 %v399_v52  ;;  %402 = vadd.xlane.f32.xlu0 %v401_v53 }
 0x32b   :  { %v885_v54 = vpop.eup %884 }
 0x32c   :  { %v404_v55 = vsel %vm376_vm3, %v885_v54, 0.0 }
 0x32d   :  { %405 = vadd.xlane.f32.xlu1 %v404_v55 }
 0x32f   :  { %v887_v56 = vpop.eup %886 }
 0x330   :  { %v407_v57 = vsel %vm376_vm3, %v887_v56, 0.0 }
 0x331   :  { %408 = vadd.xlane.f32.xlu0 %v407_v57 }
 0x333   :  { %v889_v58 = vpop.eup %888 }
 0x334   :  { %v410_v59 = vsel %vm376_vm3, %v889_v58, 0.0 }
 0x335   :  { %411 = vadd.xlane.f32.xlu1 %v410_v59 }
 0x346   :  { %878 = vrot.lane.b32.xlu1 %v877_v27, %s1022_s3 }
 0x347   :  { %873 = vrot.lane.b32.xlu0 %v872_v24, %s1022_s3 }
 0x3b6   :  { %v403_v60 = vpop.xlane.xlu0 %402 }
 0x3b7   :  { %890 = vrcp.f32 %v403_v60 }
 0x3ba   :  { %v406_v61 = vpop.xlane.xlu1 %405 }
 0x3bb   :  { %892 = vrcp.f32 %v406_v61 }
 0x3be   :  { %v409_v62 = vpop.xlane.xlu0 %408 }
 0x3bf   :  { %894 = vrcp.f32 %v409_v62 }
 0x3c1   :  { %v891_v63 = vpop.eup %890 }
 0x3c2   :  { %v874_v0 = vpop.permute.xlu0 %873  ;;  %v412_v1 = vpop.xlane.xlu1 %411  ;;  %v421_v2 = vmul.f32 %v891_v63, %v883_v51 }
 0x3c3   :  { %v876_v3 = vunpack.i.h.bf16 %v874_v0  ;;  %v875_v4 = vunpack.i.l.bf16 %v874_v0  ;;  %896 = vrcp.f32 %v412_v1 }
 0x3c4   :  { %812 = vmatprep.mubr.msk.f32.mxu1 %vm376_vm3, %v421_v2 }
 0x3c5   :  { %v847_v5 = vpack.c.bf16 %v876_v3, %v875_v4  ;;  %v893_v6 = vpop.eup %892 }
 0x3c6   :  { %v879_v7 = vpop.permute.xlu1 %878  ;;  %v422_v11 = vmul.f32 %v893_v6, %v885_v54 }
 0x3c7   :  { %v881_v8 = vunpack.i.h.bf16 %v879_v7  ;;  %v880_v9 = vunpack.i.l.bf16 %v879_v7  ;;  %848 = vmatprep.subr.bf16.mxu1 %v847_v5 }
 0x3c8   :  { %850 = vmatpush3.bf16.msra.mxu1 %v847_v5 }
 0x3c9   :  { %v895_v10 = vpop.eup %894  ;;  %v851_v12 = vpack.c.bf16 %v881_v8, %v880_v9 }
 0x3ca   :  { %v423_v13 = vmul.f32 %v895_v10, %v887_v56 }
 0x3cb   :  { %813 = vmatmul.mubr.msk.f32.vlgmr.msra.gmra.mrb[4].mxu1 %vm376_vm3, %v422_v11  ;;  %852 = vmatprep.subr.bf16.mxu1 %v851_v12 }
 0x3cc   :  { %854 = vmatpush3.bf16.msra.mxu1 %v851_v12  ;;  %819 = vmatprep.mubr.msk.f32.mxu1 %vm376_vm3, %v423_v13 }
 0x3cd   :  { %v897_v14 = vpop.eup %896 }
 0x3ce   :  { %v424_v15 = vmul.f32 %v897_v14, %v889_v58 }
 0x3d0   :  { %820 = vmatmul.mubr.msk.f32.vlgmr.msra.gmra.mrb[6].mxu1 %vm376_vm3, %v424_v15 }
 0x49e   :  { %v814_v24 = vpop.f32.mrb[4].mxu1 }
 0x49f   :  { %v614_v25 = vmul.f32 %v814_v24, %v752_v22  ;;  %v503_v26 = vpop.f32.mrb[5].mxu1 }
 0x4a0   :  { %v613_v27 = vmul.f32 %v751_v23, %v503_v26 }
 0x4a1   :  { %v618_v28 = vsel %vm100_vm0, %v614_v25, 0.0 }
 0x4a2   :  { %v617_v29 = vsel %vm100_vm0, %v613_v27, 0.0 }
 0x4a3   :  { %v619_v30 = vadd.f32 %v618_v28, %v617_v29  ;;  %v821_v31 = vpop.f32.mrb[6].mxu1 }
 0x4a4   :  { %v616_v32 = vmul.f32 %v821_v31, %v752_v22  ;;  %v590_v33 = vpop.f32.mrb[7].mxu1 }
 0x4a5   :  { %v615_v34 = vmul.f32 %v751_v23, %v590_v33  ;;  %830 = vmatprep.mubr.msk.f32.mxu0 %vm100_vm0, %v619_v30 }
 0x4a6   :  { %v621_v35 = vsel %vm100_vm0, %v616_v32, 0.0 }
 0x4a7   :  { %v620_v36 = vsel %vm100_vm0, %v615_v34, 0.0 }
 0x4a8   :  { %v622_v37 = vadd.f32 %v621_v35, %v620_v36 }
 0x4aa   :  { %831 = vmatmul.mubr.msk.f32.vlgmr.msra.gmra.mrb[4].mxu0 %vm100_vm0, %v622_v37 }
 0x57d   :  { %v832_v39 = vpop.f32.mrb[4].mxu0 }
 0x57e   :  { %v712_v40 = vadd.f32 %v832_v39, %v753_v38  ;;  %v706_v41 = vpop.f32.mrb[5].mxu0 }
 0x57f   :  { %v707_v42 = vadd.f32 %v753_v38, %v706_v41 }
 0x580   :  { %716 = vst.msk [vmem:[#allocation11 + $0x8] sm:$0xff] %vm100_vm0, %v712_v40 }
 0x581   :  { %715 = vst.msk [vmem:[#allocation11] sm:$0xff] %vm100_vm0, %v707_v42 }
 0x582   :  { %997 = shalt.err (!%p994_p8)
}
 0x583   :  { %s998_s19 = scalar_lea.hbm %s1208_s8, 256 }
 0x584   :  { %p999_p9 = scmp.ne.s32.totalorder %s1208_s8, %s998_s19  ;;  %p1002_p10 = scmp.lt.u32.totalorder %s998_s19, %s1208_s8 }
 0x586   :  { %p1004_p11 = pnand %p1002_p10, %p999_p9 }
 0x588   :  { %1007 = shalt.err (!%p1004_p11)
}
 0x589   :  { %728 = dma.vmem_to_hbm [thread:$0]  %s723_s14, 256, %s1208_s8, [#allocation5], %s1018_s16, %s1018_s16, %s1019_s17  }
 0x58a   :  { %1014 = dma.done.wait [#allocation5], 256  }
 0x58b   :  { %1015 = vsyncadd [#allocation5], 4294967040 }
 0x58c   :  { %732 = vsyncpa [#allocation4], 1 }
 0x58d   :  { %733 = vsyncpa [#allocation7], 1 }
 0x58e   :  { %734 = vsyncpa [#allocation10], 1 }
 0x58f   :  { %735 = vsyncpa [#allocation5], 1 }

</bundles_post_ra>
